<compile_context>
chip_gen: v5e
topology: v5e:2x2
jax: 0.10.0
libtpu: 0.0.40
codegen_flags: <defaults>
</compile_context>

<pallas_src>
from functools import partial

import jax
import jax.numpy as jnp
from jax import lax
from jax.experimental import pallas as pl
from jax.experimental.pallas import tpu as pltpu


def lstm_fc_kernel(tok_ref, emb_proj_ref, whh_ref, wfc_ref, bfc_ref, out_ref):
    # tok_ref:      (T*Bp, 1) int32  time-major, batch-padded tokens
    # emb_proj_ref: (Vp, 4H)  f32    emb @ W_ih + (b_ih+b_hh), g-cols x2, rows zero-padded
    # whh_ref:      (H, 4H)   f32    W_hh^T, g-cols x2
    # wfc_ref:      (H, Cp)   f32    fc.weight^T zero-padded to Cp=128 columns
    # bfc_ref:      (1, Cp)   f32    fc.bias zero-padded
    # out_ref:      (Bp, Cp)  f32    padded logits
    TB = tok_ref.shape[0]
    Bp, _ = out_ref.shape
    T = TB // Bp
    H = whh_ref.shape[0]
    Vp = emb_proj_ref.shape[0]

    # Fused embedding gather + input projection: one-hot(tokens) @ emb_proj.
    # Single MXU push, entirely off the serial recurrence path.
    tok = tok_ref[...]                                              # (TB, 1) int32
    vocab_iota = lax.broadcasted_iota(jnp.int32, (TB, Vp), 1)       # (TB, Vp)
    onehot = (tok == vocab_iota).astype(jnp.float32)                # (TB, Vp)
    xproj = jnp.dot(onehot, emb_proj_ref[...],
                    preferred_element_type=jnp.float32)             # (TB, 4H)

    whh = whh_ref[...]

    h = jnp.zeros((Bp, H), jnp.float32)
    c = jnp.zeros((Bp, H), jnp.float32)
    # T is tiny and static: Python-unrolled loop, sublane-aligned static slices.
    for t in range(T):
        # Only the recurrent matmul sits on the serial critical path.
        gates = xproj[t * Bp:(t + 1) * Bp, :] + jnp.dot(
            h, whh, preferred_element_type=jnp.float32)             # (Bp, 4H) == 1 vreg
        # Single EUP pass over the whole gate vreg; g pre-scaled by 2 so
        # tanh(g_orig) == 2*sigmoid(2*g_orig) - 1.
        s = jax.nn.sigmoid(gates)
        i_g = s[:, 0 * H:1 * H]
        f_g = s[:, 1 * H:2 * H]
        g_g = 2.0 * s[:, 2 * H:3 * H] - 1.0
        o_g = s[:, 3 * H:4 * H]
        c = f_g * c + i_g * g_g
        h = o_g * jnp.tanh(c)

    # Lane-dense (Bp, 128) unmasked store; wrapper slices [:B, :C].
    out_ref[...] = jnp.dot(h, wfc_ref[...],
                           preferred_element_type=jnp.float32) + bfc_ref[...]


def prepare_params(params, vocab_pad=32, out_pad=128):
    """One-time (load-time) parameter preparation — NOT on the per-call path.

    Folds the input projection, biases and the g-gate 2x scale, and zero-pads
    the vocab rows / fc output columns for clean (8,128) tiles and a
    lane-dense output store.
    """
    emb = params["embedding"].astype(jnp.float32)      # (V, E)
    wih_t = params["wih_t"].astype(jnp.float32)        # (E, 4H)
    whh_t = params["whh_t"].astype(jnp.float32)        # (H, 4H)
    b = params["b"].astype(jnp.float32)                # (1, 4H)
    wfc_t = params["wfc_t"].astype(jnp.float32)        # (H, C)
    bfc = params["bfc"].astype(jnp.float32)            # (1, C)
    H = whh_t.shape[0]
    V = emb.shape[0]
    C = wfc_t.shape[1]

    # Scale g-gate columns by 2 so tanh(g) = 2*sigmoid(2g) - 1 after a single
    # sigmoid over all 4H gate columns.
    scale = jnp.concatenate(
        [jnp.ones((2 * H,), jnp.float32),
         2.0 * jnp.ones((H,), jnp.float32),
         jnp.ones((H,), jnp.float32)])[None, :]        # (1, 4H)

    emb_proj = emb @ (wih_t * scale) + b * scale       # (V, 4H)
    emb_proj_p = jnp.zeros((vocab_pad, 4 * H), jnp.float32).at[:V, :].set(emb_proj)
    whh_s = whh_t * scale
    wfc_p = jnp.zeros((H, out_pad), jnp.float32).at[:, :C].set(wfc_t)
    bfc_p = jnp.zeros((1, out_pad), jnp.float32).at[:, :C].set(bfc)
    return {"emb_proj": emb_proj_p, "whh": whh_s, "wfc": wfc_p, "bfc": bfc_p}


@partial(jax.jit, static_argnums=(2,))
def protein_classifier_forward(tokens, kparams, num_classes):
    """tokens: int32 (B, T), values in [0, 21).  Returns (B, num_classes) logits."""
    B, T = tokens.shape
    Bp = max(8, ((B + 7) // 8) * 8)          # fill the f32 sublane dimension
    Cp = kparams["wfc"].shape[1]

    # Tiny (all < 256 B) token reshuffles, fused into the single jit dispatch:
    # pad batch with token 0 (rows are independent), go time-major, flatten.
    tok_p = jnp.pad(tokens, ((0, Bp - B), (0, 0)))     # (Bp, T)
    tok_tm = tok_p.T.reshape(T * Bp, 1)                # (T*Bp, 1)

    vmem = pl.BlockSpec(memory_space=pltpu.MemorySpace.VMEM)
    out_p = pl.pallas_call(
        lstm_fc_kernel,
        out_shape=jax.ShapeDtypeStruct((Bp, Cp), jnp.float32),
        in_specs=[vmem] * 5,
        out_specs=vmem,
    )(tok_tm, kparams["emb_proj"], kparams["whh"], kparams["wfc"], kparams["bfc"])
    return out_p[:B, :num_classes]


def reference_forward(tokens, params):
    """Pure-JAX reference mirroring the PyTorch forward (unprepared params)."""
    emb_table = params["embedding"]
    wih_t, whh_t, b = params["wih_t"], params["whh_t"], params["b"]
    wfc_t, bfc = params["wfc_t"], params["bfc"]
    H = whh_t.shape[0]

    x = jnp.take(emb_table, tokens, axis=0).astype(jnp.float32)  # (B, T, E)
    B, T, _ = x.shape
    h = jnp.zeros((B, H), jnp.float32)
    c = jnp.zeros((B, H), jnp.float32)
    for t in range(T):
        gates = x[:, t, :] @ wih_t + h @ whh_t + b
        i_g = jax.nn.sigmoid(gates[:, 0 * H:1 * H])
        f_g = jax.nn.sigmoid(gates[:, 1 * H:2 * H])
        g_g = jnp.tanh(gates[:, 2 * H:3 * H])
        o_g = jax.nn.sigmoid(gates[:, 3 * H:4 * H])
        c = f_g * c + i_g * g_g
        h = o_g * jnp.tanh(c)
    return h @ wfc_t + bfc


def init_params(key, vocab=21, embedding_dim=16, hidden_dim=32, num_classes=4):
    """Deterministic synthetic parameters (PyTorch-like uniform init scales)."""
    ks = jax.random.split(key, 7)
    E, H, C = embedding_dim, hidden_dim, num_classes
    k_lstm = 1.0 / jnp.sqrt(H)
    k_fc = 1.0 / jnp.sqrt(H)
    emb = jax.random.normal(ks[0], (vocab, E), jnp.float32)
    w_ih = jax.random.uniform(ks[1], (4 * H, E), jnp.float32, -k_lstm, k_lstm)
    w_hh = jax.random.uniform(ks[2], (4 * H, H), jnp.float32, -k_lstm, k_lstm)
    b_ih = jax.random.uniform(ks[3], (4 * H,), jnp.float32, -k_lstm, k_lstm)
    b_hh = jax.random.uniform(ks[4], (4 * H,), jnp.float32, -k_lstm, k_lstm)
    w_fc = jax.random.uniform(ks[5], (C, H), jnp.float32, -k_fc, k_fc)
    b_fc = jax.random.uniform(ks[6], (C,), jnp.float32, -k_fc, k_fc)
    return {
        "embedding": emb,
        "wih_t": w_ih.T,                    # (E, 4H)
        "whh_t": w_hh.T,                    # (H, 4H)
        "b": (b_ih + b_hh)[None, :],        # (1, 4H)
        "wfc_t": w_fc.T,                    # (H, C)
        "bfc": b_fc[None, :],               # (1, C)
    }


if __name__ == "__main__":
    key = jax.random.PRNGKey(0)
    k_params, k_tokens = jax.random.split(key)

    B, T = 2, 8
    num_classes = 4
    params = init_params(k_params, num_classes=num_classes)
    tokens = jax.random.randint(k_tokens, (B, T), 0, 21, dtype=jnp.int32)

    # One-time parameter preparation, hoisted off the per-call path.
    kparams = jax.tree_util.tree_map(jax.block_until_ready, prepare_params(params))

    out = protein_classifier_forward(tokens, kparams, num_classes)
    out = jax.block_until_ready(out)

    ref = reference_forward(tokens, params)
    assert out.shape == (B, num_classes)
    assert jnp.allclose(out, ref, atol=1e-4, rtol=1e-4), (out, ref)
    print("KERNEL_OK")
</pallas_src>

<mosaic_0001>
module attributes {stable_mosaic.version = 11 : i64} {
  func.func @lstm_fc_kernel(%arg0: memref<64x1xi32, #tpu.memory_space<vmem>>, %arg1: memref<32x128xf32, #tpu.memory_space<vmem>>, %arg2: memref<32x128xf32, #tpu.memory_space<vmem>>, %arg3: memref<32x128xf32, #tpu.memory_space<vmem>>, %arg4: memref<1x128xf32, #tpu.memory_space<vmem>>, %arg5: memref<8x128xf32, #tpu.memory_space<vmem>>) attributes {dimension_semantics = [], scalar_prefetch = 0 : i64, scratch_operands = 0 : i64, tpu.core_type = #tpu.core_type<tc>} {
    %c0 = arith.constant 0 : index
    %c0_0 = arith.constant 0 : index
    %0 = vector.load %arg0[%c0, %c0_0] : memref<64x1xi32, #tpu.memory_space<vmem>>, vector<64x1xi32>
    %1 = tpu.iota {dimensions = array<i32: 1>} : vector<64x32xi32>
    %2 = vector.broadcast %0 : vector<64x1xi32> to vector<64x32xi32>
    %3 = arith.cmpi eq, %2, %1 : vector<64x32xi32>
    %4 = arith.extui %3 : vector<64x32xi1> to vector<64x32xi32>
    %5 = arith.sitofp %4 : vector<64x32xi32> to vector<64x32xf32>
    %c0_1 = arith.constant 0 : index
    %c0_2 = arith.constant 0 : index
    %6 = vector.load %arg1[%c0_1, %c0_2] : memref<32x128xf32, #tpu.memory_space<vmem>>, vector<32x128xf32>
    %cst = arith.constant dense<0.000000e+00> : vector<64x128xf32>
    %7 = tpu.matmul %5, %6, %cst {dimension_numbers = #tpu.dot_dimension_numbers<[1], [0], [0], [1], [0, 0, 1, 1], [], []>} : vector<64x32xf32>, vector<32x128xf32>, vector<64x128xf32> -> vector<64x128xf32>
    %c0_3 = arith.constant 0 : index
    %c0_4 = arith.constant 0 : index
    %8 = vector.load %arg2[%c0_3, %c0_4] : memref<32x128xf32, #tpu.memory_space<vmem>>, vector<32x128xf32>
    %cst_5 = arith.constant 0.000000e+00 : f32
    %9 = vector.broadcast %cst_5 : f32 to vector<8x32xf32>
    %cst_6 = arith.constant 0.000000e+00 : f32
    %10 = vector.broadcast %cst_6 : f32 to vector<8x32xf32>
    %11 = vector.extract_strided_slice %7 {offsets = [0, 0], sizes = [8, 128], strides = [1, 1]} : vector<64x128xf32> to vector<8x128xf32>
    %cst_7 = arith.constant dense<0.000000e+00> : vector<8x128xf32>
    %12 = tpu.matmul %9, %8, %cst_7 {dimension_numbers = #tpu.dot_dimension_numbers<[1], [0], [0], [1], [0, 0, 1, 1], [], []>} : vector<8x32xf32>, vector<32x128xf32>, vector<8x128xf32> -> vector<8x128xf32>
    %13 = arith.addf %11, %12 : vector<8x128xf32>
    %14 = arith.negf %13 : vector<8x128xf32>
    %15 = math.exp %14 : vector<8x128xf32>
    %cst_8 = arith.constant 1.000000e+00 : f32
    %16 = vector.broadcast %cst_8 : f32 to vector<8x128xf32>
    %17 = arith.addf %16, %15 : vector<8x128xf32>
    %18 = arith.divf %16, %17 : vector<8x128xf32>
    %19 = vector.extract_strided_slice %18 {offsets = [0, 0], sizes = [8, 32], strides = [1, 1]} : vector<8x128xf32> to vector<8x32xf32>
    %20 = vector.extract_strided_slice %18 {offsets = [0, 32], sizes = [8, 32], strides = [1, 1]} : vector<8x128xf32> to vector<8x32xf32>
    %21 = vector.extract_strided_slice %18 {offsets = [0, 64], sizes = [8, 32], strides = [1, 1]} : vector<8x128xf32> to vector<8x32xf32>
    %cst_9 = arith.constant 2.000000e+00 : f32
    %22 = vector.broadcast %cst_9 : f32 to vector<8x32xf32>
    %23 = arith.mulf %22, %21 : vector<8x32xf32>
    %cst_10 = arith.constant 1.000000e+00 : f32
    %24 = vector.broadcast %cst_10 : f32 to vector<8x32xf32>
    %25 = arith.subf %23, %24 : vector<8x32xf32>
    %26 = vector.extract_strided_slice %18 {offsets = [0, 96], sizes = [8, 32], strides = [1, 1]} : vector<8x128xf32> to vector<8x32xf32>
    %27 = arith.mulf %20, %10 : vector<8x32xf32>
    %28 = arith.mulf %19, %25 : vector<8x32xf32>
    %29 = arith.addf %27, %28 : vector<8x32xf32>
    %30 = math.tanh %29 : vector<8x32xf32>
    %31 = arith.mulf %26, %30 : vector<8x32xf32>
    %32 = vector.extract_strided_slice %7 {offsets = [8, 0], sizes = [8, 128], strides = [1, 1]} : vector<64x128xf32> to vector<8x128xf32>
    %cst_11 = arith.constant dense<0.000000e+00> : vector<8x128xf32>
    %33 = tpu.matmul %31, %8, %cst_11 {dimension_numbers = #tpu.dot_dimension_numbers<[1], [0], [0], [1], [0, 0, 1, 1], [], []>} : vector<8x32xf32>, vector<32x128xf32>, vector<8x128xf32> -> vector<8x128xf32>
    %34 = arith.addf %32, %33 : vector<8x128xf32>
    %35 = arith.negf %34 : vector<8x128xf32>
    %36 = math.exp %35 : vector<8x128xf32>
    %cst_12 = arith.constant 1.000000e+00 : f32
    %37 = vector.broadcast %cst_12 : f32 to vector<8x128xf32>
    %38 = arith.addf %37, %36 : vector<8x128xf32>
    %39 = arith.divf %37, %38 : vector<8x128xf32>
    %40 = vector.extract_strided_slice %39 {offsets = [0, 0], sizes = [8, 32], strides = [1, 1]} : vector<8x128xf32> to vector<8x32xf32>
    %41 = vector.extract_strided_slice %39 {offsets = [0, 32], sizes = [8, 32], strides = [1, 1]} : vector<8x128xf32> to vector<8x32xf32>
    %42 = vector.extract_strided_slice %39 {offsets = [0, 64], sizes = [8, 32], strides = [1, 1]} : vector<8x128xf32> to vector<8x32xf32>
    %cst_13 = arith.constant 2.000000e+00 : f32
    %43 = vector.broadcast %cst_13 : f32 to vector<8x32xf32>
    %44 = arith.mulf %43, %42 : vector<8x32xf32>
    %cst_14 = arith.constant 1.000000e+00 : f32
    %45 = vector.broadcast %cst_14 : f32 to vector<8x32xf32>
    %46 = arith.subf %44, %45 : vector<8x32xf32>
    %47 = vector.extract_strided_slice %39 {offsets = [0, 96], sizes = [8, 32], strides = [1, 1]} : vector<8x128xf32> to vector<8x32xf32>
    %48 = arith.mulf %41, %29 : vector<8x32xf32>
    %49 = arith.mulf %40, %46 : vector<8x32xf32>
    %50 = arith.addf %48, %49 : vector<8x32xf32>
    %51 = math.tanh %50 : vector<8x32xf32>
    %52 = arith.mulf %47, %51 : vector<8x32xf32>
    %53 = vector.extract_strided_slice %7 {offsets = [16, 0], sizes = [8, 128], strides = [1, 1]} : vector<64x128xf32> to vector<8x128xf32>
    %cst_15 = arith.constant dense<0.000000e+00> : vector<8x128xf32>
    %54 = tpu.matmul %52, %8, %cst_15 {dimension_numbers = #tpu.dot_dimension_numbers<[1], [0], [0], [1], [0, 0, 1, 1], [], []>} : vector<8x32xf32>, vector<32x128xf32>, vector<8x128xf32> -> vector<8x128xf32>
    %55 = arith.addf %53, %54 : vector<8x128xf32>
    %56 = arith.negf %55 : vector<8x128xf32>
    %57 = math.exp %56 : vector<8x128xf32>
    %cst_16 = arith.constant 1.000000e+00 : f32
    %58 = vector.broadcast %cst_16 : f32 to vector<8x128xf32>
    %59 = arith.addf %58, %57 : vector<8x128xf32>
    %60 = arith.divf %58, %59 : vector<8x128xf32>
    %61 = vector.extract_strided_slice %60 {offsets = [0, 0], sizes = [8, 32], strides = [1, 1]} : vector<8x128xf32> to vector<8x32xf32>
    %62 = vector.extract_strided_slice %60 {offsets = [0, 32], sizes = [8, 32], strides = [1, 1]} : vector<8x128xf32> to vector<8x32xf32>
    %63 = vector.extract_strided_slice %60 {offsets = [0, 64], sizes = [8, 32], strides = [1, 1]} : vector<8x128xf32> to vector<8x32xf32>
    %cst_17 = arith.constant 2.000000e+00 : f32
    %64 = vector.broadcast %cst_17 : f32 to vector<8x32xf32>
    %65 = arith.mulf %64, %63 : vector<8x32xf32>
    %cst_18 = arith.constant 1.000000e+00 : f32
    %66 = vector.broadcast %cst_18 : f32 to vector<8x32xf32>
    %67 = arith.subf %65, %66 : vector<8x32xf32>
    %68 = vector.extract_strided_slice %60 {offsets = [0, 96], sizes = [8, 32], strides = [1, 1]} : vector<8x128xf32> to vector<8x32xf32>
    %69 = arith.mulf %62, %50 : vector<8x32xf32>
    %70 = arith.mulf %61, %67 : vector<8x32xf32>
    %71 = arith.addf %69, %70 : vector<8x32xf32>
    %72 = math.tanh %71 : vector<8x32xf32>
    %73 = arith.mulf %68, %72 : vector<8x32xf32>
    %74 = vector.extract_strided_slice %7 {offsets = [24, 0], sizes = [8, 128], strides = [1, 1]} : vector<64x128xf32> to vector<8x128xf32>
    %cst_19 = arith.constant dense<0.000000e+00> : vector<8x128xf32>
    %75 = tpu.matmul %73, %8, %cst_19 {dimension_numbers = #tpu.dot_dimension_numbers<[1], [0], [0], [1], [0, 0, 1, 1], [], []>} : vector<8x32xf32>, vector<32x128xf32>, vector<8x128xf32> -> vector<8x128xf32>
    %76 = arith.addf %74, %75 : vector<8x128xf32>
    %77 = arith.negf %76 : vector<8x128xf32>
    %78 = math.exp %77 : vector<8x128xf32>
    %cst_20 = arith.constant 1.000000e+00 : f32
    %79 = vector.broadcast %cst_20 : f32 to vector<8x128xf32>
    %80 = arith.addf %79, %78 : vector<8x128xf32>
    %81 = arith.divf %79, %80 : vector<8x128xf32>
    %82 = vector.extract_strided_slice %81 {offsets = [0, 0], sizes = [8, 32], strides = [1, 1]} : vector<8x128xf32> to vector<8x32xf32>
    %83 = vector.extract_strided_slice %81 {offsets = [0, 32], sizes = [8, 32], strides = [1, 1]} : vector<8x128xf32> to vector<8x32xf32>
    %84 = vector.extract_strided_slice %81 {offsets = [0, 64], sizes = [8, 32], strides = [1, 1]} : vector<8x128xf32> to vector<8x32xf32>
    %cst_21 = arith.constant 2.000000e+00 : f32
    %85 = vector.broadcast %cst_21 : f32 to vector<8x32xf32>
    %86 = arith.mulf %85, %84 : vector<8x32xf32>
    %cst_22 = arith.constant 1.000000e+00 : f32
    %87 = vector.broadcast %cst_22 : f32 to vector<8x32xf32>
    %88 = arith.subf %86, %87 : vector<8x32xf32>
    %89 = vector.extract_strided_slice %81 {offsets = [0, 96], sizes = [8, 32], strides = [1, 1]} : vector<8x128xf32> to vector<8x32xf32>
    %90 = arith.mulf %83, %71 : vector<8x32xf32>
    %91 = arith.mulf %82, %88 : vector<8x32xf32>
    %92 = arith.addf %90, %91 : vector<8x32xf32>
    %93 = math.tanh %92 : vector<8x32xf32>
    %94 = arith.mulf %89, %93 : vector<8x32xf32>
    %95 = vector.extract_strided_slice %7 {offsets = [32, 0], sizes = [8, 128], strides = [1, 1]} : vector<64x128xf32> to vector<8x128xf32>
    %cst_23 = arith.constant dense<0.000000e+00> : vector<8x128xf32>
    %96 = tpu.matmul %94, %8, %cst_23 {dimension_numbers = #tpu.dot_dimension_numbers<[1], [0], [0], [1], [0, 0, 1, 1], [], []>} : vector<8x32xf32>, vector<32x128xf32>, vector<8x128xf32> -> vector<8x128xf32>
    %97 = arith.addf %95, %96 : vector<8x128xf32>
    %98 = arith.negf %97 : vector<8x128xf32>
    %99 = math.exp %98 : vector<8x128xf32>
    %cst_24 = arith.constant 1.000000e+00 : f32
    %100 = vector.broadcast %cst_24 : f32 to vector<8x128xf32>
    %101 = arith.addf %100, %99 : vector<8x128xf32>
    %102 = arith.divf %100, %101 : vector<8x128xf32>
    %103 = vector.extract_strided_slice %102 {offsets = [0, 0], sizes = [8, 32], strides = [1, 1]} : vector<8x128xf32> to vector<8x32xf32>
    %104 = vector.extract_strided_slice %102 {offsets = [0, 32], sizes = [8, 32], strides = [1, 1]} : vector<8x128xf32> to vector<8x32xf32>
    %105 = vector.extract_strided_slice %102 {offsets = [0, 64], sizes = [8, 32], strides = [1, 1]} : vector<8x128xf32> to vector<8x32xf32>
    %cst_25 = arith.constant 2.000000e+00 : f32
    %106 = vector.broadcast %cst_25 : f32 to vector<8x32xf32>
    %107 = arith.mulf %106, %105 : vector<8x32xf32>
    %cst_26 = arith.constant 1.000000e+00 : f32
    %108 = vector.broadcast %cst_26 : f32 to vector<8x32xf32>
    %109 = arith.subf %107, %108 : vector<8x32xf32>
    %110 = vector.extract_strided_slice %102 {offsets = [0, 96], sizes = [8, 32], strides = [1, 1]} : vector<8x128xf32> to vector<8x32xf32>
    %111 = arith.mulf %104, %92 : vector<8x32xf32>
    %112 = arith.mulf %103, %109 : vector<8x32xf32>
    %113 = arith.addf %111, %112 : vector<8x32xf32>
    %114 = math.tanh %113 : vector<8x32xf32>
    %115 = arith.mulf %110, %114 : vector<8x32xf32>
    %116 = vector.extract_strided_slice %7 {offsets = [40, 0], sizes = [8, 128], strides = [1, 1]} : vector<64x128xf32> to vector<8x128xf32>
    %cst_27 = arith.constant dense<0.000000e+00> : vector<8x128xf32>
    %117 = tpu.matmul %115, %8, %cst_27 {dimension_numbers = #tpu.dot_dimension_numbers<[1], [0], [0], [1], [0, 0, 1, 1], [], []>} : vector<8x32xf32>, vector<32x128xf32>, vector<8x128xf32> -> vector<8x128xf32>
    %118 = arith.addf %116, %117 : vector<8x128xf32>
    %119 = arith.negf %118 : vector<8x128xf32>
    %120 = math.exp %119 : vector<8x128xf32>
    %cst_28 = arith.constant 1.000000e+00 : f32
    %121 = vector.broadcast %cst_28 : f32 to vector<8x128xf32>
    %122 = arith.addf %121, %120 : vector<8x128xf32>
    %123 = arith.divf %121, %122 : vector<8x128xf32>
    %124 = vector.extract_strided_slice %123 {offsets = [0, 0], sizes = [8, 32], strides = [1, 1]} : vector<8x128xf32> to vector<8x32xf32>
    %125 = vector.extract_strided_slice %123 {offsets = [0, 32], sizes = [8, 32], strides = [1, 1]} : vector<8x128xf32> to vector<8x32xf32>
    %126 = vector.extract_strided_slice %123 {offsets = [0, 64], sizes = [8, 32], strides = [1, 1]} : vector<8x128xf32> to vector<8x32xf32>
    %cst_29 = arith.constant 2.000000e+00 : f32
    %127 = vector.broadcast %cst_29 : f32 to vector<8x32xf32>
    %128 = arith.mulf %127, %126 : vector<8x32xf32>
    %cst_30 = arith.constant 1.000000e+00 : f32
    %129 = vector.broadcast %cst_30 : f32 to vector<8x32xf32>
    %130 = arith.subf %128, %129 : vector<8x32xf32>
    %131 = vector.extract_strided_slice %123 {offsets = [0, 96], sizes = [8, 32], strides = [1, 1]} : vector<8x128xf32> to vector<8x32xf32>
    %132 = arith.mulf %125, %113 : vector<8x32xf32>
    %133 = arith.mulf %124, %130 : vector<8x32xf32>
    %134 = arith.addf %132, %133 : vector<8x32xf32>
    %135 = math.tanh %134 : vector<8x32xf32>
    %136 = arith.mulf %131, %135 : vector<8x32xf32>
    %137 = vector.extract_strided_slice %7 {offsets = [48, 0], sizes = [8, 128], strides = [1, 1]} : vector<64x128xf32> to vector<8x128xf32>
    %cst_31 = arith.constant dense<0.000000e+00> : vector<8x128xf32>
    %138 = tpu.matmul %136, %8, %cst_31 {dimension_numbers = #tpu.dot_dimension_numbers<[1], [0], [0], [1], [0, 0, 1, 1], [], []>} : vector<8x32xf32>, vector<32x128xf32>, vector<8x128xf32> -> vector<8x128xf32>
    %139 = arith.addf %137, %138 : vector<8x128xf32>
    %140 = arith.negf %139 : vector<8x128xf32>
    %141 = math.exp %140 : vector<8x128xf32>
    %cst_32 = arith.constant 1.000000e+00 : f32
    %142 = vector.broadcast %cst_32 : f32 to vector<8x128xf32>
    %143 = arith.addf %142, %141 : vector<8x128xf32>
    %144 = arith.divf %142, %143 : vector<8x128xf32>
    %145 = vector.extract_strided_slice %144 {offsets = [0, 0], sizes = [8, 32], strides = [1, 1]} : vector<8x128xf32> to vector<8x32xf32>
    %146 = vector.extract_strided_slice %144 {offsets = [0, 32], sizes = [8, 32], strides = [1, 1]} : vector<8x128xf32> to vector<8x32xf32>
    %147 = vector.extract_strided_slice %144 {offsets = [0, 64], sizes = [8, 32], strides = [1, 1]} : vector<8x128xf32> to vector<8x32xf32>
    %cst_33 = arith.constant 2.000000e+00 : f32
    %148 = vector.broadcast %cst_33 : f32 to vector<8x32xf32>
    %149 = arith.mulf %148, %147 : vector<8x32xf32>
    %cst_34 = arith.constant 1.000000e+00 : f32
    %150 = vector.broadcast %cst_34 : f32 to vector<8x32xf32>
    %151 = arith.subf %149, %150 : vector<8x32xf32>
    %152 = vector.extract_strided_slice %144 {offsets = [0, 96], sizes = [8, 32], strides = [1, 1]} : vector<8x128xf32> to vector<8x32xf32>
    %153 = arith.mulf %146, %134 : vector<8x32xf32>
    %154 = arith.mulf %145, %151 : vector<8x32xf32>
    %155 = arith.addf %153, %154 : vector<8x32xf32>
    %156 = math.tanh %155 : vector<8x32xf32>
    %157 = arith.mulf %152, %156 : vector<8x32xf32>
    %158 = vector.extract_strided_slice %7 {offsets = [56, 0], sizes = [8, 128], strides = [1, 1]} : vector<64x128xf32> to vector<8x128xf32>
    %cst_35 = arith.constant dense<0.000000e+00> : vector<8x128xf32>
    %159 = tpu.matmul %157, %8, %cst_35 {dimension_numbers = #tpu.dot_dimension_numbers<[1], [0], [0], [1], [0, 0, 1, 1], [], []>} : vector<8x32xf32>, vector<32x128xf32>, vector<8x128xf32> -> vector<8x128xf32>
    %160 = arith.addf %158, %159 : vector<8x128xf32>
    %161 = arith.negf %160 : vector<8x128xf32>
    %162 = math.exp %161 : vector<8x128xf32>
    %cst_36 = arith.constant 1.000000e+00 : f32
    %163 = vector.broadcast %cst_36 : f32 to vector<8x128xf32>
    %164 = arith.addf %163, %162 : vector<8x128xf32>
    %165 = arith.divf %163, %164 : vector<8x128xf32>
    %166 = vector.extract_strided_slice %165 {offsets = [0, 0], sizes = [8, 32], strides = [1, 1]} : vector<8x128xf32> to vector<8x32xf32>
    %167 = vector.extract_strided_slice %165 {offsets = [0, 32], sizes = [8, 32], strides = [1, 1]} : vector<8x128xf32> to vector<8x32xf32>
    %168 = vector.extract_strided_slice %165 {offsets = [0, 64], sizes = [8, 32], strides = [1, 1]} : vector<8x128xf32> to vector<8x32xf32>
    %cst_37 = arith.constant 2.000000e+00 : f32
    %169 = vector.broadcast %cst_37 : f32 to vector<8x32xf32>
    %170 = arith.mulf %169, %168 : vector<8x32xf32>
    %cst_38 = arith.constant 1.000000e+00 : f32
    %171 = vector.broadcast %cst_38 : f32 to vector<8x32xf32>
    %172 = arith.subf %170, %171 : vector<8x32xf32>
    %173 = vector.extract_strided_slice %165 {offsets = [0, 96], sizes = [8, 32], strides = [1, 1]} : vector<8x128xf32> to vector<8x32xf32>
    %174 = arith.mulf %167, %155 : vector<8x32xf32>
    %175 = arith.mulf %166, %172 : vector<8x32xf32>
    %176 = arith.addf %174, %175 : vector<8x32xf32>
    %177 = math.tanh %176 : vector<8x32xf32>
    %178 = arith.mulf %173, %177 : vector<8x32xf32>
    %c0_39 = arith.constant 0 : index
    %c0_40 = arith.constant 0 : index
    %179 = vector.load %arg3[%c0_39, %c0_40] : memref<32x128xf32, #tpu.memory_space<vmem>>, vector<32x128xf32>
    %cst_41 = arith.constant dense<0.000000e+00> : vector<8x128xf32>
    %180 = tpu.matmul %178, %179, %cst_41 {dimension_numbers = #tpu.dot_dimension_numbers<[1], [0], [0], [1], [0, 0, 1, 1], [], []>} : vector<8x32xf32>, vector<32x128xf32>, vector<8x128xf32> -> vector<8x128xf32>
    %c0_42 = arith.constant 0 : index
    %c0_43 = arith.constant 0 : index
    %181 = vector.load %arg4[%c0_42, %c0_43] : memref<1x128xf32, #tpu.memory_space<vmem>>, vector<1x128xf32>
    %182 = vector.broadcast %181 : vector<1x128xf32> to vector<8x128xf32>
    %183 = arith.addf %180, %182 : vector<8x128xf32>
    %c0_44 = arith.constant 0 : index
    %c0_45 = arith.constant 0 : index
    %184 = vector.load %arg5[%c0_44, %c0_45] : memref<8x128xf32, #tpu.memory_space<vmem>>, vector<8x128xf32>
    tpu.vector_store %arg5[%c0_44, %c0_45], %183 {strides = array<i32>} : memref<8x128xf32, #tpu.memory_space<vmem>>, vector<8x128xf32>,
    return
  }
}

</mosaic_0001>

<bundles_post_ra>
// kernel: protein_classifier_forward.1
= control target key start
LH: loop header
LB: loop body
LE: loop exit
PB: predicated region body
PF: predicated region fallthrough
CT: control target
= control target key end

     0   :  { %v804_v0 = vmov 0   ;;  %v28_v12 = vlaneseq  ;;  %vm82_vm0 = vcmask 261120   ;;  %v805_v15 = vmov 0.0   ;;  %s807_s14 = smov 32   ;;  %s1024_s0 = inlined_call_operand.vmem [shape: s32[64,1], index: 0, kind: input, shape index: {}]   ;;  %s1025_s1 = inlined_call_operand.vmem [shape: f32[32,128], index: 1, kind: input, shape index: {}]   ;;  %s1026_s2 = inlined_call_operand.vmem [shape: f32[32,128], index: 2, kind: input, shape index: {}]   ;;  %s1027_s3 = inlined_call_operand.vmem [shape: f32[32,128], index: 3, kind: input, shape index: {}]   ;;  %s1028_s4 = inlined_call_operand.vmem [shape: f32[1,128], index: 4, kind: input, shape index: {}]   ;;  %s1029_s5 = inlined_call_operand.vmem [shape: f32[8,128], index: 5, kind: output, shape index: {}]  }
   0x1   :  { %752 = vset.pattern.permute.xlu0 %v804_v0  ;;  %v25_v1 = vld [vmem:[%s1024_s0 + $0x28] sm:$0xff]  ;;  %753 = vset.pattern.permute.xlu2 %v804_v0  ;;  %v81_v2 = vld [vmem:[%s1025_s1 + $0x18] sm:$0xff]  ;;  %v80_v3 = vld [vmem:[%s1025_s1 + $0x10] sm:$0xff] }
   0x2   :  { %46 = vperm.xlu0 %752, %v25_v1   ;;  %754 = vset.pattern.permute.xlu1 %v804_v0  ;;  %v79_v4 = vld [vmem:[%s1025_s1 + $0x8] sm:$0xff]  ;;  %v20_v5 = vld [vmem:[%s1024_s0] sm:$0xff]  ;;  %v27_v6 = vld [vmem:[%s1024_s0 + $0x38] sm:$0xff]  ;;  %v895_v13 = vand.u32 127, %v28_v12 }
   0x3   :  { %740 = vmatpush.msra.mxu1 %v81_v2  ;;  %119 = vmatpush.msra.mxu0 %v81_v2  ;;  %v78_v7 = vld [vmem:[%s1025_s1] sm:$0xff]  ;;  %v862_v8 = vld [vmem:[%s1026_s2 + $0x18] sm:$0xff]  ;;  %v867_v9 = vld [vmem:[%s1026_s2 + $0x10] sm:$0xff] }
   0x4   :  { %741 = vmatpush.msra.mxu2 %v81_v2  ;;  %v874_v10 = vld [vmem:[%s1026_s2 + $0x8] sm:$0xff]  ;;  %295 = vmatpush.msra.mxu3 %v862_v8  ;;  %v885_v11 = vld [vmem:[%s1026_s2] sm:$0xff]  ;;  %s806_s2 = smov 64   ;;  %v26_v44 = vld [vmem:[%s1024_s0 + $0x30] sm:$0xff] }
   0x5   :  { %742 = vmatpush.msra.mxu1 %v80_v3  ;;  %120 = vmatpush.msra.mxu0 %v80_v3  ;;  %v21_v45 = vld [vmem:[%s1024_s0 + $0x8] sm:$0xff] }
   0x6   :  { %743 = vmatpush.msra.mxu2 %v80_v3  ;;  %296 = vmatpush.msra.mxu3 %v867_v9 }
   0x7   :  { %744 = vmatpush.msra.mxu1 %v79_v4  ;;  %121 = vmatpush.msra.mxu0 %v79_v4 }
   0x8   :  { %745 = vmatpush.msra.mxu2 %v79_v4  ;;  %297 = vmatpush.msra.mxu3 %v874_v10 }
   0x9   :  { %746 = vmatpush.msra.mxu1 %v78_v7  ;;  %122 = vmatpush.msra.mxu0 %v78_v7 }
   0xa   :  { %31 = vperm.xlu0 %752, %v20_v5   ;;  %747 = vmatpush.msra.mxu2 %v78_v7 }
   0xb   :  { %167 = vmatpush.msrb.mxu1 %v862_v8  ;;  %298 = vmatpush.msra.mxu3 %v885_v11 }
   0xc   :  { %231 = vmatpush.msrb.mxu2 %v862_v8 }
   0xd   :  { %168 = vmatpush.msrb.mxu1 %v867_v9  ;;  %487 = vmatpush.msrb.mxu3 %v862_v8 }
   0xe   :  { %232 = vmatpush.msrb.mxu2 %v867_v9 }
   0xf   :  { %169 = vmatpush.msrb.mxu1 %v874_v10  ;;  %488 = vmatpush.msrb.mxu3 %v867_v9 }
  0x10   :  { %233 = vmatpush.msrb.mxu2 %v874_v10 }
  0x11   :  { %170 = vmatpush.msrb.mxu1 %v885_v11  ;;  %489 = vmatpush.msrb.mxu3 %v874_v10 }
  0x12   :  { %52 = vperm.xlu0 %752, %v27_v6   ;;  %234 = vmatpush.msrb.mxu2 %v885_v11 }
  0x13   :  { %490 = vmatpush.msrb.mxu3 %v885_v11 }
  0x74   :  { %v47_v14 = vpop.permute.xlu0 %46 }
  0x75   :  { %vm59_vm1 = vcmp.eq.s32.totalorder %v47_v14, %v895_v13 }
  0x76   :  { %v705_v16 = vsel %vm59_vm1, 1.0, %v805_v15 }
  0x77   :  { %713 = vmatmul.msk.f32.vlgmr.msra.gmra.mxu1 %vm82_vm0, %v705_v16 }
  0x78   :  { %359 = vmatpush.msra.mxu1 %v862_v8 }
  0x7a   :  { %360 = vmatpush.msra.mxu1 %v867_v9 }
  0x7c   :  { %v32_v17 = vpop.permute.xlu0 %31  ;;  %361 = vmatpush.msra.mxu1 %v874_v10 }
  0x7d   :  { %vm54_vm2 = vcmp.eq.s32.totalorder %v32_v17, %v895_v13 }
  0x7e   :  { %v700_v18 = vsel %vm54_vm2, 1.0, %v805_v15  ;;  %362 = vmatpush.msra.mxu1 %v885_v11 }
  0x7f   :  { %708 = vmatmul.msk.f32.vlgmr.msra.gmra.mxu0 %vm82_vm0, %v700_v18  ;;  %171 = vmatmul.f32.vlgmr.msrb.gmra.mxu1 %v805_v15 }
  0x80   :  { %551 = vmatpush.msrb.mxu1 %v862_v8 }
  0x82   :  { %552 = vmatpush.msrb.mxu1 %v867_v9 }
  0x84   :  { %553 = vmatpush.msrb.mxu1 %v874_v10  ;;  %v53_v50 = vpop.permute.xlu0 %52 }
  0x85   :  { %vm61_vm8 = vcmp.eq.s32.totalorder %v53_v50, %v895_v13 }
  0x86   :  { %554 = vmatpush.msrb.mxu1 %v885_v11  ;;  %v707_v51 = vsel %vm61_vm8, 1.0, %v805_v15 }
  0xf4   :  { %v912_v19 = vpop.f32.mrf.mxu1 }
  0xfc   :  { %v124_v20 = vpop.f32.mrf.mxu0  ;;  %v172_v21 = vpop.f32.mrf.mxu1 }
  0xfd   :  { %v175_v22 = vadd.f32 %v172_v21, %v124_v20  ;;  %v22_v20 = vld [vmem:[%s1024_s0 + $0x10] sm:$0xff] }
  0xff   :  { %v716_v23 = vmul.f32 -1.442695, %v175_v22 }
 0x101   :  { %756 = vpow2.f32 %v716_v23 }
 0x107   :  { %v757_v24 = vpop.eup %756 }
 0x108   :  { %v179_v25 = vadd.f32 1.0, %v757_v24 }
 0x10a   :  { %758 = vrcp.f32 %v179_v25  ;;  %v191_v29 = vand.u32 2147483648, %v179_v25  ;;  %v189_v31 = vand.u32 2147483647, %v179_v25  ;;  %vm185_vm4 = vweird.f32 %v179_v25 }
 0x10c   :  { %v192_v33 = vor.u32 1.1754944e-38, %v191_v29  ;;  %vm190_vm6 = vcmp.eq.f32.partialorder %v189_v31, 8.507059e+37 }
 0x110   :  { %v759_v26 = vpop.eup %758 }
 0x111   :  { %v181_v27 = vmul.f32 %v759_v26, %v179_v25  ;;  %vm186_vm3 = vweird.f32 %v759_v26 }
 0x112   :  { %vm187_vm5 = vmor %vm185_vm4, %vm186_vm3 }
 0x113   :  { %v182_v28 = vsub.f32 1.0, %v181_v27 }
 0x115   :  { %v183_v30 = vmul.f32 %v759_v26, %v182_v28 }
 0x117   :  { %v184_v32 = vadd.f32 %v759_v26, %v183_v30 }
 0x119   :  { %v188_v34 = vsel %vm187_vm5, %v759_v26, %v184_v32 }
 0x11a   :  { %v193_v35 = vsel %vm190_vm6, %v192_v33, %v188_v34 }
 0x11b   :  { %v195_v36 = vmul.f32 2.0, %v193_v35  ;;  %v197_v40 = vmul.f32 0.0, %v193_v35 }
 0x11d   :  { %v717_v37 = vadd.f32 -1.0, %v195_v36 }
 0x11f   :  { %199 = vrot.lane.b32.xlu1 %v717_v37, %s806_s2 }
 0x191   :  { %v200_v38 = vpop.permute.xlu1 %199 }
 0x192   :  { %v202_v39 = vmul.f32 %v200_v38, %v193_v35 }
 0x194   :  { %204 = vrot.lane.b32.xlu1 %v202_v39, %s807_s14 }
 0x206   :  { %v205_v41 = vpop.permute.xlu1 %204 }
 0x207   :  { %v916_v42 = vadd.f32 %v205_v41, %v197_v40 }
 0x209   :  { %760 = vtanh.f32 %v916_v42 }
 0x20f   :  { %v761_v43 = vpop.eup %760 }
 0x210   :  { %210 = vrot.lane.b32.xlu2 %v761_v43, %s806_s2 }
 0x218   :  { %49 = vperm.xlu2 %753, %v26_v44   ;;  %v23_v44 = vld [vmem:[%s1024_s0 + $0x18] sm:$0xff] }
 0x220   :  { %34 = vperm.xlu2 %753, %v21_v45  }
 0x26a   :  { %v211_v46 = vpop.permute.xlu2 %210 }
 0x26b   :  { %v213_v47 = vmul.f32 %v211_v46, %v193_v35 }
 0x26d   :  { %215 = vrot.lane.b32.xlu1 %v213_v47, %s807_s14 }
 0x272   :  { %v50_v48 = vpop.permute.xlu2 %49 }
 0x273   :  { %vm60_vm7 = vcmp.eq.s32.totalorder %v50_v48, %v895_v13 }
 0x274   :  { %v706_v49 = vsel %vm60_vm7, 1.0, %v805_v15 }
 0x275   :  { %714 = vmatmul.msk.f32.vlgmr.msra.gmra.mxu2 %vm82_vm0, %v706_v49 }
 0x276   :  { %423 = vmatpush.msra.mxu2 %v862_v8 }
 0x278   :  { %424 = vmatpush.msra.mxu2 %v867_v9 }
 0x27a   :  { %425 = vmatpush.msra.mxu2 %v874_v10  ;;  %v35_v52 = vpop.permute.xlu2 %34 }
 0x27b   :  { %vm55_vm9 = vcmp.eq.s32.totalorder %v35_v52, %v895_v13 }
 0x27c   :  { %426 = vmatpush.msra.mxu2 %v885_v11  ;;  %v701_v53 = vsel %vm55_vm9, 1.0, %v805_v15 }
 0x27d   :  { %715 = vmatmul.msk.f32.gmra.mxu2 %vm82_vm0, %v707_v51  ;;  %709 = vmatmul.msk.f32.gmra.mxu0 %vm82_vm0, %v701_v53 }
 0x2df   :  { %v216_v54 = vpop.permute.xlu1 %215 }
 0x2e0   :  { %718 = vmatmul.msk.f32.vlgmr.msrb.gmra.mxu2 %vm82_vm0, %v216_v54 }
 0x2e1   :  { %615 = vmatpush.msrb.mxu2 %v862_v8 }
 0x2e3   :  { %616 = vmatpush.msrb.mxu2 %v867_v9 }
 0x2e5   :  { %617 = vmatpush.msrb.mxu2 %v874_v10 }
 0x2e7   :  { %618 = vmatpush.msrb.mxu2 %v885_v11 }
 0x2f8   :  { %v945_v55 = vpop.f32.mrf.mxu2 }
 0x2fa   :  { %v127_v57 = vpop.f32.mrf.mxu0 }
 0x300   :  { %v947_v56 = vpop.f32.mrf.mxu2 }
 0x363   :  { %v236_v58 = vpop.f32.mrf.mxu2 }
 0x364   :  { %v239_v59 = vadd.f32 %v236_v58, %v127_v57 }
 0x366   :  { %v719_v60 = vmul.f32 -1.442695, %v239_v59 }
 0x368   :  { %762 = vpow2.f32 %v719_v60 }
 0x36e   :  { %v763_v61 = vpop.eup %762 }
 0x36f   :  { %v243_v62 = vadd.f32 1.0, %v763_v61 }
 0x371   :  { %764 = vrcp.f32 %v243_v62  ;;  %v255_v2 = vand.u32 2147483648, %v243_v62  ;;  %v253_v4 = vand.u32 2147483647, %v243_v62  ;;  %vm249_vm11 = vweird.f32 %v243_v62 }
 0x373   :  { %v256_v6 = vor.u32 1.1754944e-38, %v255_v2  ;;  %vm254_vm13 = vcmp.eq.f32.partialorder %v253_v4, 8.507059e+37 }
 0x377   :  { %v765_v63 = vpop.eup %764 }
 0x378   :  { %v245_v0 = vmul.f32 %v765_v63, %v243_v62  ;;  %vm250_vm10 = vweird.f32 %v765_v63 }
 0x379   :  { %vm251_vm12 = vmor %vm249_vm11, %vm250_vm10 }
 0x37a   :  { %v246_v1 = vsub.f32 1.0, %v245_v0 }
 0x37c   :  { %v247_v3 = vmul.f32 %v765_v63, %v246_v1 }
 0x37e   :  { %v248_v5 = vadd.f32 %v765_v63, %v247_v3 }
 0x380   :  { %v252_v7 = vsel %vm251_vm12, %v765_v63, %v248_v5 }
 0x381   :  { %v257_v8 = vsel %vm254_vm13, %v256_v6, %v252_v7 }
 0x382   :  { %v259_v9 = vmul.f32 2.0, %v257_v8  ;;  %v261_v14 = vmul.f32 %v257_v8, %v916_v42 }
 0x384   :  { %v720_v10 = vadd.f32 -1.0, %v259_v9 }
 0x386   :  { %263 = vrot.lane.b32.xlu0 %v720_v10, %s806_s2 }
 0x3f8   :  { %v264_v11 = vpop.permute.xlu0 %263 }
 0x3f9   :  { %v266_v12 = vmul.f32 %v264_v11, %v257_v8 }
 0x3fb   :  { %268 = vrot.lane.b32.xlu1 %v266_v12, %s807_s14 }
 0x403   :  { %37 = vperm.xlu1 %754, %v22_v20  }
 0x46d   :  { %v269_v16 = vpop.permute.xlu1 %268 }
 0x46e   :  { %v271_v17 = vadd.f32 %v269_v16, %v261_v14  ;;  %v24_v16 = vld [vmem:[%s1024_s0 + $0x20] sm:$0xff] }
 0x470   :  { %766 = vtanh.f32 %v271_v17 }
 0x475   :  { %v38_v23 = vpop.permute.xlu1 %37 }
 0x476   :  { %v767_v18 = vpop.eup %766  ;;  %vm56_vm14 = vcmp.eq.s32.totalorder %v38_v23, %v895_v13 }
 0x477   :  { %274 = vrot.lane.b32.xlu2 %v767_v18, %s806_s2  ;;  %v702_v24 = vsel %vm56_vm14, 1.0, %v805_v15 }
 0x478   :  { %710 = vmatmul.msk.f32.gmra.mxu0 %vm82_vm0, %v702_v24 }
 0x4d1   :  { %v275_v21 = vpop.permute.xlu2 %274 }
 0x4d2   :  { %v277_v22 = vmul.f32 %v275_v21, %v257_v8 }
 0x4d4   :  { %279 = vrot.lane.b32.xlu0 %v277_v22, %s807_s14 }
 0x4f5   :  { %v130_v26 = vpop.f32.mrf.mxu0 }
 0x546   :  { %v280_v25 = vpop.permute.xlu0 %279 }
 0x547   :  { %721 = vmatmul.msk.f32.vlgmr.msra.gmra.mxu3 %vm82_vm0, %v280_v25 }
 0x5ca   :  { %v300_v27 = vpop.f32.mrf.mxu3 }
 0x5cb   :  { %v303_v28 = vadd.f32 %v300_v27, %v130_v26 }
 0x5cd   :  { %v722_v29 = vmul.f32 -1.442695, %v303_v28 }
 0x5cf   :  { %768 = vpow2.f32 %v722_v29 }
 0x5d5   :  { %v769_v30 = vpop.eup %768 }
 0x5d6   :  { %v307_v31 = vadd.f32 1.0, %v769_v30 }
 0x5d8   :  { %770 = vrcp.f32 %v307_v31  ;;  %v319_v35 = vand.u32 2147483648, %v307_v31  ;;  %v317_v37 = vand.u32 2147483647, %v307_v31  ;;  %vm313_vm1 = vweird.f32 %v307_v31 }
 0x5da   :  { %v320_v39 = vor.u32 1.1754944e-38, %v319_v35  ;;  %vm318_vm3 = vcmp.eq.f32.partialorder %v317_v37, 8.507059e+37 }
 0x5de   :  { %v771_v32 = vpop.eup %770 }
 0x5df   :  { %v309_v33 = vmul.f32 %v771_v32, %v307_v31  ;;  %vm314_vm15 = vweird.f32 %v771_v32 }
 0x5e0   :  { %vm315_vm2 = vmor %vm313_vm1, %vm314_vm15 }
 0x5e1   :  { %v310_v34 = vsub.f32 1.0, %v309_v33 }
 0x5e3   :  { %v311_v36 = vmul.f32 %v771_v32, %v310_v34 }
 0x5e5   :  { %v312_v38 = vadd.f32 %v771_v32, %v311_v36 }
 0x5e7   :  { %v316_v40 = vsel %vm315_vm2, %v771_v32, %v312_v38 }
 0x5e8   :  { %v321_v41 = vsel %vm318_vm3, %v320_v39, %v316_v40 }
 0x5e9   :  { %v323_v42 = vmul.f32 2.0, %v321_v41  ;;  %v325_v49 = vmul.f32 %v321_v41, %v271_v17 }
 0x5eb   :  { %v723_v43 = vadd.f32 -1.0, %v323_v42 }
 0x5ed   :  { %327 = vrot.lane.b32.xlu2 %v723_v43, %s806_s2 }
 0x5f5   :  { %40 = vperm.xlu2 %753, %v23_v44  }
 0x647   :  { %v328_v45 = vpop.permute.xlu2 %327 }
 0x648   :  { %v330_v46 = vmul.f32 %v328_v45, %v321_v41 }
 0x64a   :  { %332 = vrot.lane.b32.xlu0 %v330_v46, %s807_s14 }
 0x64f   :  { %v41_v47 = vpop.permute.xlu2 %40 }
 0x650   :  { %vm57_vm4 = vcmp.eq.s32.totalorder %v41_v47, %v895_v13 }
 0x651   :  { %v703_v48 = vsel %vm57_vm4, 1.0, %v805_v15 }
 0x652   :  { %711 = vmatmul.msk.f32.gmra.mxu0 %vm82_vm0, %v703_v48 }
 0x6bc   :  { %v333_v50 = vpop.permute.xlu0 %332 }
 0x6bd   :  { %v335_v51 = vadd.f32 %v333_v50, %v325_v49 }
 0x6bf   :  { %772 = vtanh.f32 %v335_v51 }
 0x6c5   :  { %v773_v52 = vpop.eup %772 }
 0x6c6   :  { %338 = vrot.lane.b32.xlu1 %v773_v52, %s806_s2 }
 0x6cf   :  { %v133_v58 = vpop.f32.mrf.mxu0 }
 0x738   :  { %v339_v53 = vpop.permute.xlu1 %338 }
 0x739   :  { %v341_v54 = vmul.f32 %v339_v53, %v321_v41 }
 0x73b   :  { %343 = vrot.lane.b32.xlu0 %v341_v54, %s807_s14 }
 0x7ad   :  { %v344_v57 = vpop.permute.xlu0 %343 }
 0x7ae   :  { %724 = vmatmul.msk.f32.vlgmr.msra.gmra.mxu1 %vm82_vm0, %v344_v57 }
 0x82b   :  { %v364_v59 = vpop.f32.mrf.mxu1 }
 0x82c   :  { %v367_v60 = vadd.f32 %v364_v59, %v133_v58 }
 0x82e   :  { %v725_v61 = vmul.f32 -1.442695, %v367_v60 }
 0x830   :  { %774 = vpow2.f32 %v725_v61 }
 0x836   :  { %v775_v62 = vpop.eup %774 }
 0x837   :  { %v371_v63 = vadd.f32 1.0, %v775_v62 }
 0x839   :  { %776 = vrcp.f32 %v371_v63  ;;  %v383_v3 = vand.u32 2147483648, %v371_v63  ;;  %v381_v5 = vand.u32 2147483647, %v371_v63  ;;  %vm377_vm6 = vweird.f32 %v371_v63 }
 0x83b   :  { %v384_v7 = vor.u32 1.1754944e-38, %v383_v3  ;;  %vm382_vm8 = vcmp.eq.f32.partialorder %v381_v5, 8.507059e+37 }
 0x83f   :  { %v777_v0 = vpop.eup %776 }
 0x840   :  { %v373_v1 = vmul.f32 %v777_v0, %v371_v63  ;;  %vm378_vm5 = vweird.f32 %v777_v0 }
 0x841   :  { %vm379_vm7 = vmor %vm377_vm6, %vm378_vm5 }
 0x842   :  { %v374_v2 = vsub.f32 1.0, %v373_v1 }
 0x844   :  { %v375_v4 = vmul.f32 %v777_v0, %v374_v2 }
 0x846   :  { %v376_v6 = vadd.f32 %v777_v0, %v375_v4 }
 0x848   :  { %v380_v8 = vsel %vm379_vm7, %v777_v0, %v376_v6 }
 0x849   :  { %v385_v9 = vsel %vm382_vm8, %v384_v7, %v380_v8 }
 0x84a   :  { %v387_v10 = vmul.f32 2.0, %v385_v9  ;;  %v389_v17 = vmul.f32 %v385_v9, %v335_v51 }
 0x84c   :  { %v726_v11 = vadd.f32 -1.0, %v387_v10 }
 0x84e   :  { %391 = vrot.lane.b32.xlu1 %v726_v11, %s806_s2 }
 0x8c0   :  { %v392_v12 = vpop.permute.xlu1 %391 }
 0x8c1   :  { %v394_v14 = vmul.f32 %v392_v12, %v385_v9 }
 0x8c3   :  { %396 = vrot.lane.b32.xlu2 %v394_v14, %s807_s14 }
 0x8cb   :  { %43 = vperm.xlu2 %753, %v24_v16  }
 0x91d   :  { %v397_v18 = vpop.permute.xlu2 %396 }
 0x91e   :  { %v399_v20 = vadd.f32 %v397_v18, %v389_v17 }
 0x920   :  { %778 = vtanh.f32 %v399_v20 }
 0x925   :  { %v44_v21 = vpop.permute.xlu2 %43 }
 0x926   :  { %v779_v22 = vpop.eup %778  ;;  %vm58_vm9 = vcmp.eq.s32.totalorder %v44_v21, %v895_v13 }
 0x927   :  { %v704_v23 = vsel %vm58_vm9, 1.0, %v805_v15  ;;  %402 = vrot.lane.b32.xlu0 %v779_v22, %s806_s2 }
 0x928   :  { %712 = vmatmul.msk.f32.gmra.mxu0 %vm82_vm0, %v704_v23 }
 0x999   :  { %v403_v24 = vpop.permute.xlu0 %402 }
 0x99a   :  { %v405_v25 = vmul.f32 %v403_v24, %v385_v9 }
 0x99c   :  { %407 = vrot.lane.b32.xlu1 %v405_v25, %s807_s14 }
 0x9a5   :  { %v136_v27 = vpop.f32.mrf.mxu0 }
 0xa0e   :  { %v408_v26 = vpop.permute.xlu1 %407 }
 0xa0f   :  { %727 = vmatmul.msk.f32.vlgmr.msra.gmra.mxu2 %vm82_vm0, %v408_v26 }
 0xa92   :  { %v428_v28 = vpop.f32.mrf.mxu2 }
 0xa93   :  { %v431_v29 = vadd.f32 %v428_v28, %v136_v27 }
 0xa95   :  { %v728_v30 = vmul.f32 -1.442695, %v431_v29 }
 0xa97   :  { %780 = vpow2.f32 %v728_v30 }
 0xa9d   :  { %v781_v31 = vpop.eup %780 }
 0xa9e   :  { %v435_v13 = vadd.f32 1.0, %v781_v31 }
 0xaa0   :  { %782 = vrcp.f32 %v435_v13  ;;  %v447_v34 = vand.u32 2147483648, %v435_v13  ;;  %v445_v36 = vand.u32 2147483647, %v435_v13  ;;  %vm441_vm11 = vweird.f32 %v435_v13 }
 0xaa2   :  { %v448_v38 = vor.u32 1.1754944e-38, %v447_v34  ;;  %vm446_vm13 = vcmp.eq.f32.partialorder %v445_v36, 8.507059e+37 }
 0xaa6   :  { %v783_v15 = vpop.eup %782 }
 0xaa7   :  { %v437_v32 = vmul.f32 %v783_v15, %v435_v13  ;;  %vm442_vm10 = vweird.f32 %v783_v15 }
 0xaa8   :  { %vm443_vm12 = vmor %vm441_vm11, %vm442_vm10 }
 0xaa9   :  { %v438_v33 = vsub.f32 1.0, %v437_v32 }
 0xaab   :  { %v439_v35 = vmul.f32 %v783_v15, %v438_v33 }
 0xaad   :  { %v440_v37 = vadd.f32 %v783_v15, %v439_v35 }
 0xaaf   :  { %v444_v39 = vsel %vm443_vm12, %v783_v15, %v440_v37 }
 0xab0   :  { %v449_v40 = vsel %vm446_vm13, %v448_v38, %v444_v39 }
 0xab1   :  { %v451_v41 = vmul.f32 2.0, %v449_v40  ;;  %v453_v45 = vmul.f32 %v449_v40, %v399_v20 }
 0xab3   :  { %v729_v42 = vadd.f32 -1.0, %v451_v41 }
 0xab5   :  { %455 = vrot.lane.b32.xlu0 %v729_v42, %s806_s2 }
 0xb27   :  { %v456_v43 = vpop.permute.xlu0 %455 }
 0xb28   :  { %v458_v44 = vmul.f32 %v456_v43, %v449_v40 }
 0xb2a   :  { %460 = vrot.lane.b32.xlu1 %v458_v44, %s807_s14 }
 0xb9c   :  { %v461_v46 = vpop.permute.xlu1 %460 }
 0xb9d   :  { %v463_v47 = vadd.f32 %v461_v46, %v453_v45 }
 0xb9f   :  { %784 = vtanh.f32 %v463_v47 }
 0xba5   :  { %v785_v48 = vpop.eup %784 }
 0xba6   :  { %466 = vrot.lane.b32.xlu2 %v785_v48, %s806_s2 }
 0xc00   :  { %v467_v49 = vpop.permute.xlu2 %466 }
 0xc01   :  { %v469_v50 = vmul.f32 %v467_v49, %v449_v40 }
 0xc03   :  { %471 = vrot.lane.b32.xlu0 %v469_v50, %s807_s14 }
 0xc75   :  { %v472_v51 = vpop.permute.xlu0 %471 }
 0xc76   :  { %730 = vmatmul.msk.f32.vlgmr.msrb.gmra.mxu3 %vm82_vm0, %v472_v51 }
 0xcf9   :  { %v492_v52 = vpop.f32.mrf.mxu3 }
 0xcfa   :  { %v495_v53 = vadd.f32 %v492_v52, %v912_v19 }
 0xcfc   :  { %v731_v54 = vmul.f32 -1.442695, %v495_v53 }
 0xcfe   :  { %786 = vpow2.f32 %v731_v54 }
 0xd04   :  { %v787_v57 = vpop.eup %786 }
 0xd05   :  { %v499_v58 = vadd.f32 1.0, %v787_v57 }
 0xd07   :  { %788 = vrcp.f32 %v499_v58  ;;  %v511_v62 = vand.u32 2147483648, %v499_v58  ;;  %v509_v0 = vand.u32 2147483647, %v499_v58  ;;  %vm505_vm15 = vweird.f32 %v499_v58 }
 0xd09   :  { %v512_v2 = vor.u32 1.1754944e-38, %v511_v62  ;;  %vm510_vm2 = vcmp.eq.f32.partialorder %v509_v0, 8.507059e+37 }
 0xd0d   :  { %v789_v59 = vpop.eup %788 }
 0xd0e   :  { %v501_v60 = vmul.f32 %v789_v59, %v499_v58  ;;  %vm506_vm14 = vweird.f32 %v789_v59 }
 0xd0f   :  { %vm507_vm1 = vmor %vm505_vm15, %vm506_vm14 }
 0xd10   :  { %v502_v61 = vsub.f32 1.0, %v501_v60 }
 0xd12   :  { %v503_v63 = vmul.f32 %v789_v59, %v502_v61 }
 0xd14   :  { %v504_v1 = vadd.f32 %v789_v59, %v503_v63 }
 0xd16   :  { %v508_v3 = vsel %vm507_vm1, %v789_v59, %v504_v1  ;;  %v665_v1 = vld [vmem:[%s1027_s3 + $0x18] sm:$0xff] }
 0xd17   :  { %v513_v4 = vsel %vm510_vm2, %v512_v2, %v508_v3  ;;  %v664_v2 = vld [vmem:[%s1027_s3 + $0x10] sm:$0xff]  ;;  %687 = vmatpush.msra.mxu3 %v665_v1  ;;  %v663_v3 = vld [vmem:[%s1027_s3 + $0x8] sm:$0xff] }
 0xd18   :  { %v515_v19 = vmul.f32 2.0, %v513_v4  ;;  %v517_v8 = vmul.f32 %v513_v4, %v463_v47 }
 0xd19   :  { %688 = vmatpush.msra.mxu3 %v664_v2 }
 0xd1a   :  { %v732_v5 = vadd.f32 -1.0, %v515_v19 }
 0xd1b   :  { %689 = vmatpush.msra.mxu3 %v663_v3 }
 0xd1c   :  { %519 = vrot.lane.b32.xlu1 %v732_v5, %s806_s2 }
 0xd8e   :  { %v520_v6 = vpop.permute.xlu1 %519 }
 0xd8f   :  { %v522_v7 = vmul.f32 %v520_v6, %v513_v4 }
 0xd91   :  { %524 = vrot.lane.b32.xlu2 %v522_v7, %s807_s14  ;;  %v755_v7 = vld [vmem:[%s1028_s4] ss:$0 sm:$0xff] }
 0xdeb   :  { %v525_v9 = vpop.permute.xlu2 %524 }
 0xdec   :  { %v527_v10 = vadd.f32 %v525_v9, %v517_v8 }
 0xdee   :  { %790 = vtanh.f32 %v527_v10 }
 0xdf4   :  { %v791_v11 = vpop.eup %790 }
 0xdf5   :  { %530 = vrot.lane.b32.xlu0 %v791_v11, %s806_s2 }
 0xe67   :  { %v531_v12 = vpop.permute.xlu0 %530 }
 0xe68   :  { %v533_v14 = vmul.f32 %v531_v12, %v513_v4  ;;  %v662_v4 = vld [vmem:[%s1027_s3] sm:$0xff] }
 0xe69   :  { %690 = vmatpush.msra.mxu3 %v662_v4 }
 0xe6a   :  { %535 = vrot.lane.b32.xlu1 %v533_v14, %s807_s14 }
 0xedc   :  { %v536_v16 = vpop.permute.xlu1 %535 }
 0xedd   :  { %733 = vmatmul.msk.f32.vlgmr.msrb.gmra.mxu1 %vm82_vm0, %v536_v16 }
 0xf5a   :  { %v556_v17 = vpop.f32.mrf.mxu1 }
 0xf5b   :  { %v559_v18 = vadd.f32 %v556_v17, %v945_v55 }
 0xf5d   :  { %v734_v20 = vmul.f32 -1.442695, %v559_v18 }
 0xf5f   :  { %792 = vpow2.f32 %v734_v20 }
 0xf65   :  { %v793_v21 = vpop.eup %792 }
 0xf66   :  { %v563_v22 = vadd.f32 1.0, %v793_v21 }
 0xf68   :  { %794 = vrcp.f32 %v563_v22  ;;  %v575_v26 = vand.u32 2147483648, %v563_v22  ;;  %v573_v28 = vand.u32 2147483647, %v563_v22  ;;  %vm569_vm4 = vweird.f32 %v563_v22 }
 0xf6a   :  { %v576_v30 = vor.u32 1.1754944e-38, %v575_v26  ;;  %vm574_vm6 = vcmp.eq.f32.partialorder %v573_v28, 8.507059e+37 }
 0xf6e   :  { %v795_v23 = vpop.eup %794 }
 0xf6f   :  { %v565_v24 = vmul.f32 %v795_v23, %v563_v22  ;;  %vm570_vm3 = vweird.f32 %v795_v23 }
 0xf70   :  { %vm571_vm5 = vmor %vm569_vm4, %vm570_vm3 }
 0xf71   :  { %v566_v25 = vsub.f32 1.0, %v565_v24 }
 0xf73   :  { %v567_v27 = vmul.f32 %v795_v23, %v566_v25 }
 0xf75   :  { %v568_v29 = vadd.f32 %v795_v23, %v567_v27 }
 0xf77   :  { %v572_v31 = vsel %vm571_vm5, %v795_v23, %v568_v29 }
 0xf78   :  { %v577_v13 = vsel %vm574_vm6, %v576_v30, %v572_v31 }
 0xf79   :  { %v579_v55 = vmul.f32 2.0, %v577_v13  ;;  %v581_v34 = vmul.f32 %v577_v13, %v527_v10 }
 0xf7b   :  { %v735_v15 = vadd.f32 -1.0, %v579_v55 }
 0xf7d   :  { %583 = vrot.lane.b32.xlu2 %v735_v15, %s806_s2 }
 0xfd7   :  { %v584_v32 = vpop.permute.xlu2 %583 }
 0xfd8   :  { %v586_v33 = vmul.f32 %v584_v32, %v577_v13 }
 0xfda   :  { %588 = vrot.lane.b32.xlu0 %v586_v33, %s807_s14 }
0x104c   :  { %v589_v35 = vpop.permute.xlu0 %588 }
0x104d   :  { %v591_v36 = vadd.f32 %v589_v35, %v581_v34 }
0x104f   :  { %796 = vtanh.f32 %v591_v36 }
0x1055   :  { %v797_v37 = vpop.eup %796 }
0x1056   :  { %594 = vrot.lane.b32.xlu1 %v797_v37, %s806_s2 }
0x10c8   :  { %v595_v38 = vpop.permute.xlu1 %594 }
0x10c9   :  { %v597_v39 = vmul.f32 %v595_v38, %v577_v13 }
0x10cb   :  { %599 = vrot.lane.b32.xlu2 %v597_v39, %s807_s14 }
0x1125   :  { %v600_v40 = vpop.permute.xlu2 %599 }
0x1126   :  { %736 = vmatmul.msk.f32.vlgmr.msrb.gmra.mxu2 %vm82_vm0, %v600_v40 }
0x11a9   :  { %v620_v41 = vpop.f32.mrf.mxu2 }
0x11aa   :  { %v623_v42 = vadd.f32 %v620_v41, %v947_v56 }
0x11ac   :  { %v737_v43 = vmul.f32 -1.442695, %v623_v42 }
0x11ae   :  { %798 = vpow2.f32 %v737_v43 }
0x11b4   :  { %v799_v44 = vpop.eup %798 }
0x11b5   :  { %v627_v45 = vadd.f32 1.0, %v799_v44 }
0x11b7   :  { %800 = vrcp.f32 %v627_v45  ;;  %v639_v49 = vand.u32 2147483648, %v627_v45  ;;  %v637_v51 = vand.u32 2147483647, %v627_v45  ;;  %vm633_vm8 = vweird.f32 %v627_v45 }
0x11b9   :  { %v640_v53 = vor.u32 1.1754944e-38, %v639_v49  ;;  %vm638_vm10 = vcmp.eq.f32.partialorder %v637_v51, 8.507059e+37 }
0x11bd   :  { %v801_v46 = vpop.eup %800 }
0x11be   :  { %v629_v47 = vmul.f32 %v801_v46, %v627_v45  ;;  %vm634_vm7 = vweird.f32 %v801_v46 }
0x11bf   :  { %vm635_vm9 = vmor %vm633_vm8, %vm634_vm7 }
0x11c0   :  { %v630_v48 = vsub.f32 1.0, %v629_v47 }
0x11c2   :  { %v631_v50 = vmul.f32 %v801_v46, %v630_v48 }
0x11c4   :  { %v632_v52 = vadd.f32 %v801_v46, %v631_v50 }
0x11c6   :  { %v636_v54 = vsel %vm635_vm9, %v801_v46, %v632_v52 }
0x11c7   :  { %v641_v57 = vsel %vm638_vm10, %v640_v53, %v636_v54 }
0x11c8   :  { %v643_v56 = vmul.f32 2.0, %v641_v57  ;;  %v645_v61 = vmul.f32 %v641_v57, %v591_v36 }
0x11ca   :  { %v738_v58 = vadd.f32 -1.0, %v643_v56 }
0x11cc   :  { %647 = vrot.lane.b32.xlu0 %v738_v58, %s806_s2 }
0x123e   :  { %v648_v59 = vpop.permute.xlu0 %647 }
0x123f   :  { %v650_v60 = vmul.f32 %v648_v59, %v641_v57 }
0x1241   :  { %652 = vrot.lane.b32.xlu1 %v650_v60, %s807_s14 }
0x12b3   :  { %v653_v62 = vpop.permute.xlu1 %652 }
0x12b4   :  { %v655_v63 = vadd.f32 %v653_v62, %v645_v61 }
0x12b6   :  { %802 = vtanh.f32 %v655_v63 }
0x12bc   :  { %v803_v0 = vpop.eup %802 }
0x12bd   :  { %658 = vrot.lane.b32.xlu2 %v803_v0, %s806_s2 }
0x1317   :  { %v659_v19 = vpop.permute.xlu2 %658 }
0x1318   :  { %v661_v5 = vmul.f32 %v659_v19, %v641_v57 }
0x131a   :  { %671 = vrot.lane.b32.xlu0 %v661_v5, %s807_s14 }
0x138c   :  { %v672_v6 = vpop.permute.xlu0 %671 }
0x138d   :  { %739 = vmatmul.msk.f32.vlgmr.msra.gmra.mxu3 %vm82_vm0, %v672_v6 }
0x1410   :  { %v692_v8 = vpop.f32.mrf.mxu3 }
0x1411   :  { %v693_v9 = vadd.f32 %v755_v7, %v692_v8 }
0x1413   :  { %695 = vst [vmem:[%s1029_s5] sm:$0xff] %v693_v9 }

</bundles_post_ra>
